<compile_context>
chip_gen: v5e
topology: v5e:2x2
jax: 0.10.0
libtpu: 0.0.40
codegen_flags: <defaults>
</compile_context>

<pallas_src>
from functools import partial

import numpy as np
import jax
import jax.numpy as jnp
from jax.experimental import pallas as pl
from jax.experimental.pallas import tpu as pltpu


# ----------------------------------------------------------------------------
# Pallas kernel: tiled matmul with f32 accumulator (out = x @ w)
# ----------------------------------------------------------------------------

def _patch_embed_matmul_kernel(x_ref, w_ref, o_ref, acc_ref):
    k = pl.program_id(2)

    @pl.when(k == 0)
    def _():
        acc_ref[...] = jnp.zeros_like(acc_ref)

    acc_ref[...] += jnp.dot(x_ref[...], w_ref[...],
                            preferred_element_type=jnp.float32)

    @pl.when(k == pl.num_programs(2) - 1)
    def _():
        o_ref[...] = acc_ref[...].astype(o_ref.dtype)


def _round_up(x, m):
    return (x + m - 1) // m * m


def _tiled_matmul(x, w, *, out_dtype, tm=128, tn=256, tk=256):
    """x: (M, K), w: (K, N) -> (M, N). Pads M/K/N up to tile multiples."""
    M, K = x.shape
    K2, N = w.shape
    assert K == K2, (K, K2)

    # Shrink tiles for small problems (last two block dims must be multiples
    # of (8, 128) or equal to the padded array dims — padding guarantees it).
    tm = min(tm, _round_up(M, 8))
    tn = min(tn, _round_up(N, 128))
    tk = min(tk, _round_up(K, 128))

    Mp, Kp, Np = _round_up(M, tm), _round_up(K, tk), _round_up(N, tn)
    if (Mp, Kp) != (M, K):
        x = jnp.pad(x, ((0, Mp - M), (0, Kp - K)))
    if (Kp, Np) != (K, N):
        w = jnp.pad(w, ((0, Kp - K), (0, Np - N)))

    out = pl.pallas_call(
        _patch_embed_matmul_kernel,
        out_shape=jax.ShapeDtypeStruct((Mp, Np), out_dtype),
        grid_spec=pltpu.PrefetchScalarGridSpec(
            num_scalar_prefetch=0,
            grid=(Mp // tm, Np // tn, Kp // tk),
            in_specs=[
                pl.BlockSpec((tm, tk), lambda i, j, k: (i, k)),
                pl.BlockSpec((tk, tn), lambda i, j, k: (k, j)),
            ],
            out_specs=pl.BlockSpec((tm, tn), lambda i, j, k: (i, j)),
            scratch_shapes=[pltpu.VMEM((tm, tn), jnp.float32)],
        ),
        compiler_params=pltpu.CompilerParams(
            dimension_semantics=("parallel", "parallel", "arbitrary"),
        ),
    )(x, w)

    if (Mp, Np) != (M, N):
        out = out[:M, :N]
    return out


# ----------------------------------------------------------------------------
# PatchEmbed module (mirrors the PyTorch forward semantics)
# ----------------------------------------------------------------------------

class PatchEmbed:
    def __init__(self, patch_size=14, temporal_patch_size=2, in_channels=3,
                 embed_dim=1152, *, param_dtype=jnp.float32, key=None):
        self.patch_size = patch_size
        self.temporal_patch_size = temporal_patch_size
        self.in_channels = in_channels
        self.embed_dim = embed_dim
        k_in = in_channels * temporal_patch_size * patch_size * patch_size
        if key is None:
            key = jax.random.PRNGKey(0)
        # Conv3d(in_ch, embed_dim, kernel=stride=patch, bias=False) weight:
        # shape (E, C, T, P, P); flattened over (C, T, P, P) it is a matmul.
        fan_in = float(k_in)
        bound = 1.0 / np.sqrt(fan_in)
        self.weight = jax.random.uniform(
            key, (embed_dim, in_channels, temporal_patch_size,
                  patch_size, patch_size),
            minval=-bound, maxval=bound, dtype=jnp.float32,
        ).astype(param_dtype)
        # Pre-flatten / transpose once so the kernel sees a lane-dense
        # (K, embed_dim) operand.
        self._w2d = self.weight.reshape(embed_dim, k_in).T  # (K, E)
        self._k_in = k_in

    def __call__(self, hidden_states):
        target_dtype = self.weight.dtype
        # matches: hidden_states.view(-1, C, T, P, P) -> conv -> view(-1, E)
        x = hidden_states.reshape(-1, self._k_in).astype(target_dtype)
        out = _tiled_matmul(x, self._w2d, out_dtype=target_dtype)
        return out.reshape(-1, self.embed_dim)


# ----------------------------------------------------------------------------
# Main
# ----------------------------------------------------------------------------

if __name__ == "__main__":
    key = jax.random.PRNGKey(0)
    k_w, k_x = jax.random.split(key)

    # Small but layout-realistic shapes: patch geometry as in Qwen2-VL
    # (K = 3*2*14*14 = 1176, padded in-kernel to 1280), embed_dim kept a
    # lane-dense multiple of 128 but reduced to 256 for a small run.
    patch_size = 14
    temporal_patch_size = 2
    in_channels = 3
    embed_dim = 256
    num_patches = 64
    k_in = in_channels * temporal_patch_size * patch_size * patch_size  # 1176

    patch_embed = PatchEmbed(
        patch_size=patch_size,
        temporal_patch_size=temporal_patch_size,
        in_channels=in_channels,
        embed_dim=embed_dim,
        param_dtype=jnp.float32,
        key=k_w,
    )

    hidden_states = jax.random.normal(k_x, (num_patches, k_in), dtype=jnp.float32)

    out = patch_embed(hidden_states)
    out = jax.block_until_ready(out)

    # Reference: the conv with kernel==stride is exactly this matmul.
    ref = jnp.dot(hidden_states, patch_embed._w2d,
                  preferred_element_type=jnp.float32)

    assert out.shape == (num_patches, embed_dim), out.shape
    assert bool(jnp.all(jnp.isfinite(out)))
    assert bool(jnp.allclose(out, ref, rtol=2e-2, atol=2e-2)), float(
        jnp.max(jnp.abs(out - ref)))

    # bf16 storage path (v6e/v7x-friendly): same kernel, halved HBM/VMEM traffic.
    pe_bf16 = PatchEmbed(
        patch_size=patch_size,
        temporal_patch_size=temporal_patch_size,
        in_channels=in_channels,
        embed_dim=embed_dim,
        param_dtype=jnp.bfloat16,
        key=k_w,
    )
    out_bf16 = jax.block_until_ready(pe_bf16(hidden_states))
    assert out_bf16.shape == (num_patches, embed_dim)
    assert bool(jnp.all(jnp.isfinite(out_bf16.astype(jnp.float32))))

    print("KERNEL_OK")
</pallas_src>

<mosaic_0001>
module attributes {stable_mosaic.version = 11 : i64} {
  func.func @_patch_embed_matmul_kernel(%arg0: i32, %arg1: i32, %arg2: i32, %arg3: memref<64x256xf32, #tpu.memory_space<vmem>>, %arg4: memref<256x256xf32, #tpu.memory_space<vmem>>, %arg5: memref<64x256xf32, #tpu.memory_space<vmem>>, %arg6: memref<64x256xf32, #tpu.memory_space<vmem>>) attributes {dimension_semantics = [#tpu.dimension_semantics<parallel>, #tpu.dimension_semantics<parallel>, #tpu.dimension_semantics<arbitrary>], iteration_bounds = array<i64: 1, 1, 5>, scalar_prefetch = 0 : i64, scratch_operands = 1 : i64, tpu.core_type = #tpu.core_type<tc>, window_params = [{transform_indices = @transform_0, window_bounds = array<i64: 64, 256>}, {transform_indices = @transform_1, window_bounds = array<i64: 256, 256>}, {transform_indices = @transform_2, window_bounds = array<i64: 64, 256>}]} {
    %c0_i32 = arith.constant 0 : i32
    %0 = arith.cmpi eq, %arg2, %c0_i32 : i32
    %1 = arith.extui %0 : i1 to i32
    %c0_i32_0 = arith.constant 0 : i32
    %2 = arith.cmpi ne, %1, %c0_i32_0 : i32
    scf.if %2 {
      %cst_9 = arith.constant 0.000000e+00 : f32
      %12 = vector.broadcast %cst_9 : f32 to vector<64x256xf32>
      %c0_10 = arith.constant 0 : index
      %c0_11 = arith.constant 0 : index
      %13 = vector.load %arg6[%c0_10, %c0_11] : memref<64x256xf32, #tpu.memory_space<vmem>>, vector<64x256xf32>
      tpu.vector_store %arg6[%c0_10, %c0_11], %12 {strides = array<i32>} : memref<64x256xf32, #tpu.memory_space<vmem>>, vector<64x256xf32>,
    } else {
    }
    %c0 = arith.constant 0 : index
    %c0_1 = arith.constant 0 : index
    %3 = vector.load %arg6[%c0, %c0_1] : memref<64x256xf32, #tpu.memory_space<vmem>>, vector<64x256xf32>
    %c0_2 = arith.constant 0 : index
    %c0_3 = arith.constant 0 : index
    %4 = vector.load %arg3[%c0_2, %c0_3] : memref<64x256xf32, #tpu.memory_space<vmem>>, vector<64x256xf32>
    %c0_4 = arith.constant 0 : index
    %c0_5 = arith.constant 0 : index
    %5 = vector.load %arg4[%c0_4, %c0_5] : memref<256x256xf32, #tpu.memory_space<vmem>>, vector<256x256xf32>
    %cst = arith.constant dense<0.000000e+00> : vector<64x256xf32>
    %6 = tpu.matmul %4, %5, %cst {dimension_numbers = #tpu.dot_dimension_numbers<[1], [0], [0], [1], [0, 0, 1, 1], [], []>} : vector<64x256xf32>, vector<256x256xf32>, vector<64x256xf32> -> vector<64x256xf32>
    %7 = arith.addf %3, %6 : vector<64x256xf32>
    %c0_6 = arith.constant 0 : index
    %c0_7 = arith.constant 0 : index
    %8 = vector.load %arg6[%c0_6, %c0_7] : memref<64x256xf32, #tpu.memory_space<vmem>>, vector<64x256xf32>
    tpu.vector_store %arg6[%c0_6, %c0_7], %7 {strides = array<i32>} : memref<64x256xf32, #tpu.memory_space<vmem>>, vector<64x256xf32>,
    %c4_i32 = arith.constant 4 : i32
    %9 = arith.cmpi eq, %arg2, %c4_i32 : i32
    %10 = arith.extui %9 : i1 to i32
    %c0_i32_8 = arith.constant 0 : i32
    %11 = arith.cmpi ne, %10, %c0_i32_8 : i32
    scf.if %11 {
      %c0_9 = arith.constant 0 : index
      %c0_10 = arith.constant 0 : index
      %12 = vector.load %arg6[%c0_9, %c0_10] : memref<64x256xf32, #tpu.memory_space<vmem>>, vector<64x256xf32>
      %c0_11 = arith.constant 0 : index
      %c0_12 = arith.constant 0 : index
      %13 = vector.load %arg5[%c0_11, %c0_12] : memref<64x256xf32, #tpu.memory_space<vmem>>, vector<64x256xf32>
      tpu.vector_store %arg5[%c0_11, %c0_12], %12 {strides = array<i32>} : memref<64x256xf32, #tpu.memory_space<vmem>>, vector<64x256xf32>,
    } else {
    }
    return
  }
  func.func @transform_0(%arg0: i32, %arg1: i32, %arg2: i32) -> (i32, i32) {
    %c0_i32 = arith.constant 0 : i32
    return %arg0, %arg2 : i32, i32
  }
  func.func @transform_1(%arg0: i32, %arg1: i32, %arg2: i32) -> (i32, i32) {
    %c0_i32 = arith.constant 0 : i32
    return %arg2, %arg1 : i32, i32
  }
  func.func @transform_2(%arg0: i32, %arg1: i32, %arg2: i32) -> (i32, i32) {
    %c0_i32 = arith.constant 0 : i32
    return %arg0, %arg1 : i32, i32
  }
}

</mosaic_0001>

<bundles_post_ra>
// kernel: tpu_custom_call.1
= control target key start
LH: loop header
LB: loop body
LE: loop exit
PB: predicated region body
PF: predicated region fallthrough
CT: control target
= control target key end

     0   :  { %7 = vsyncpa [#allocation4], 0  ;;  %s1160_s0 = inlined_call_operand.hbm [shape: f32[64,1280], index: 0, kind: input, shape index: {}]   ;;  %s1161_s1 = inlined_call_operand.hbm [shape: f32[1280,256], index: 1, kind: input, shape index: {}]   ;;  %s1162_s2 = inlined_call_operand.hbm [shape: f32[64,256], index: 2, kind: output, shape index: {}]  }
   0x1   :  { %9 = vsyncpa [#allocation4 + $0x1], 0 }
   0x2   :  { %10 = vsyncpa [#allocation7], 0 }
   0x3   :  { %12 = vsyncpa [#allocation7 + $0x1], 0 }
   0x4   :  { %13 = vsyncpa [#allocation5], 0  ;;  %s962_s9 = smov 0   ;;  %s964_s10 = smov 0  }
   0x5   :  { %s966_s11 = smov 0   ;;  %s968_s12 = smov 0  }
   0x6   :  { %s970_s13 = smov 0   ;;  %s972_s14 = smov 0  }
   0x7 LB: > { %s697_s15 = sadd.s32 4294967295, %s938_s14   ;;  %s31_s16 = sadd.s32 1, %s934_s13  ;;  %s938_s14 = sphi %s972_s14, %s19_s14   ;;  %s934_s13 = sphi %s970_s13, %s1170_s13   ;;  %s930_s12 = sphi %s968_s12, %s1169_s12   ;;  %s926_s11 = sphi %s966_s11, %s1168_s11   ;;  %s922_s10 = sphi %s964_s10, %s1167_s10   ;;  %s918_s9 = sphi %s962_s9, %s1166_s9  }
   0x8   : > { %p32_p0 = scmp.ge.s32.totalorder %s31_s16, 5  ;;  %s47_s17 = sadd.s32 1, %s926_s11 }
   0x9   : > { %p54_p1 = scmp.ne.s32.totalorder %s926_s11, %s922_s10  ;;  %p55_p2 = scmp.eq.s32.totalorder %s938_s14, 0 }
   0xa   : > { %s1172_s16 = smov (%p32_p0, %s31_s16), 0  ;;  %p60_p4 = scmp.ne.s32.totalorder %s922_s10, %s918_s9 }
   0xb   : > { %p998_p3 = por %p55_p2, %p54_p1  ;;  %s43_s19 = ssub.s32 %s934_s13, %s1172_s16 }
   0xc   : > { %p61_p5 = scmp.eq.s32.totalorder %s697_s15, 0  ;;  %p45_p6 = scmp.eq.s32.totalorder %s43_s19, 0 }
   0xd   : > { %p734_p8 = scmp.lt.s32.totalorder %s938_s14, 5  ;;  %s1016_s22 = sand.u32 1, %s926_s11  }
   0xe   : > { %p1007_p7 = por %p61_p5, %p60_p4  ;;  %s716_s23 = sshll.u32 %s934_s13, 4 }
   0xf   : > { %s1013_s21 = scalar_select %p45_p6, %s926_s11, %s47_s17  }
  0x10   : > { %s700_s24 = sshll.u32 %s1016_s22, 7  ;;  %s152_s27 = scalar_lea.hbm %s1160_s0, %s716_s23 }
  0x11   : > { %s153_s28 = sshll.u32 %s152_s27, 4  ;;  %s144_s29 = scalar_lea.vmem [#allocation3], %s700_s24  ;;  %s154_s28 = int_to_ptr.hbm [resolvable:$true] %s153_s28 }
  0x12   : > { %s155_s30 = sshll.u32 %s144_s29, 4  ;;  %p1025_p9 = pnand %p734_p8, %p998_p3  ;;  %s156_s30 = int_to_ptr.vmem [resolvable:$true] %s155_s30 }
  0x13   : > { %p707_p10 = scmp.ge.s32.totalorder %s938_s14, 1  ;;  %s141_s4 = scalar_lea.sflag [#allocation4], %s1016_s22 }
  0x14   : > { %s940_s5 = smov 1280   ;;  %s941_s6 = smov 256  }
  0x15   : > { %s942_s7 = smov 16   ;;  %p188_p11 = scmp.lt.s32.totalorder %s938_s14, 6 }
  0x16   : > { %730 = dma.hbm_to_vmem [thread:$0]  (!%p1025_p9), %s154_s28, 2048, %s156_s30, %s141_s4, %s940_s5, %s941_s6, %s942_s7  }
  0x17   : > { %s703_s8 = sshll.u32 %s1016_s22, 9  ;;  %s718_s9 = sshll.u32 %s934_s13, 9 }
  0x18   : > { %p189_p12 = pnand %p707_p10, %p188_p11  ;;  %s177_s19 = scalar_lea.hbm %s1161_s1, %s718_s9 }
  0x19   : > { %s169_s23 = scalar_lea.vmem [#allocation6], %s703_s8  ;;  %s178_s25 = sshll.u32 %s177_s19, 4  ;;  %s179_s25 = int_to_ptr.hbm [resolvable:$true] %s178_s25 }
  0x1a   : > { %s180_s24 = sshll.u32 %s169_s23, 4  ;;  %s166_s26 = scalar_lea.sflag [#allocation7], %s1016_s22  ;;  %s181_s24 = int_to_ptr.vmem [resolvable:$true] %s180_s24 }
  0x1b   : > { %733 = dma.hbm_to_vmem [thread:$0]  (!%p1025_p9), %s179_s25, 8192, %s181_s24, %s166_s26, %s941_s6, %s941_s6, %s942_s7  }
  0x1c   : > { %192 = sbr.rel (%p189_p12) target bundleno = 310 (0x136), region = 28  ;;  %s194_s27 = sand.u32 (!%p189_p12), 1, %s922_s10  }
  0x1d   : > { %s708_s28 = sshll.u32 (!%p189_p12), %s194_s27, 7  ;;  %s195_s29 = scalar_lea.sflag (!%p189_p12), [#allocation4], %s194_s27 }
  0x1e   : > { %s1043_s30 = scalar_lea.vmem (!%p189_p12), [#allocation3], %s708_s28 }
  0x21   : > { %905 = dma.done.wait (%p1007_p7), %s195_s29, 2048  }
  0x22   : > { %907 = vsyncadd (%p1007_p7), %s195_s29, 4294965248  ;;  %s709_s4 = sshll.u32 %s194_s27, 9  ;;  %s205_s5 = scalar_lea.sflag [#allocation7], %s194_s27 }
  0x23   : > { %s1049_s8 = scalar_lea.vmem [#allocation6], %s709_s4 }
  0x24   : > { %909 = dma.done.wait (%p1007_p7), %s205_s5, 8192  }
  0x25   : > { %911 = vsyncadd (%p1007_p7), %s205_s5, 4294959104  ;;  %p710_p13 = scmp.ne.s32.totalorder %s930_s12, 0 }
  0x27   : > { %239 = sbr.rel (%p710_p13) target bundleno = 61 (0x3d), region = 40 }
  0x2c   : > { %v943_v0 = vmov 0.0  }
  0x2d   : > { %240 = vst [vmem:[#allocation2 + $0x30] sm:$0xff] %v943_v0 }
  0x2e   : > { %241 = vst [vmem:[#allocation2] sm:$0xff] %v943_v0 }
  0x2f   : > { %242 = vst [vmem:[#allocation2 + $0x58] sm:$0xff] %v943_v0 }
  0x30   : > { %243 = vst [vmem:[#allocation2 + $0x18] sm:$0xff] %v943_v0 }
  0x31   : > { %244 = vst [vmem:[#allocation2 + $0x50] sm:$0xff] %v943_v0 }
  0x32   : > { %245 = vst [vmem:[#allocation2 + $0x68] sm:$0xff] %v943_v0 }
  0x33   : > { %246 = vst [vmem:[#allocation2 + $0x8] sm:$0xff] %v943_v0 }
  0x34   : > { %247 = vst [vmem:[#allocation2 + $0x48] sm:$0xff] %v943_v0 }
  0x35   : > { %248 = vst [vmem:[#allocation2 + $0x40] sm:$0xff] %v943_v0 }
  0x36   : > { %249 = vst [vmem:[#allocation2 + $0x20] sm:$0xff] %v943_v0 }
  0x37   : > { %250 = vst [vmem:[#allocation2 + $0x10] sm:$0xff] %v943_v0 }
  0x38   : > { %251 = vst [vmem:[#allocation2 + $0x38] sm:$0xff] %v943_v0 }
  0x39   : > { %252 = vst [vmem:[#allocation2 + $0x60] sm:$0xff] %v943_v0 }
  0x3a   : > { %253 = vst [vmem:[#allocation2 + $0x70] sm:$0xff] %v943_v0 }
  0x3b   : > { %254 = vst [vmem:[#allocation2 + $0x78] sm:$0xff] %v943_v0 }
  0x3c   : > { %255 = vst [vmem:[#allocation2 + $0x28] sm:$0xff] %v943_v0 }
  0x3d PF: > { %v319_v1 = vld [vmem:[%s1049_s8 + $0xf8] sm:$0xff]  ;;  %v317_v3 = vld [vmem:[%s1049_s8 + $0xe8] sm:$0xff]  ;;  %v318_v7 = vld [vmem:[%s1049_s8 + $0xf0] sm:$0xff]  ;;  %p711_p0 = scmp.ne.s32.totalorder %s930_s12, 4 }
  0x3e   : > { %v351_v2 = vld [vmem:[%s1049_s8 + $0x1f8] sm:$0xff]  ;;  %434 = vmatpush.msra.mxu2 %v319_v1  ;;  %v349_v4 = vld [vmem:[%s1049_s8 + $0x1e8] sm:$0xff]  ;;  %v350_v8 = vld [vmem:[%s1049_s8 + $0x1f0] sm:$0xff]  ;;  %352 = vmatpush.msra.mxu0 %v318_v7 }
  0x3f   : > { %475 = vmatpush.msra.mxu3 %v351_v2  ;;  %v315_v5 = vld [vmem:[%s1049_s8 + $0xd8] sm:$0xff]  ;;  %v316_v9 = vld [vmem:[%s1049_s8 + $0xe0] sm:$0xff]  ;;  %393 = vmatpush.msra.mxu1 %v350_v8  ;;  %v313_v11 = vld [vmem:[%s1049_s8 + $0xc8] sm:$0xff] }
  0x40   : > { %v347_v6 = vld [vmem:[%s1049_s8 + $0x1d8] sm:$0xff]  ;;  %435 = vmatpush.msra.mxu2 %v317_v3  ;;  %v348_v10 = vld [vmem:[%s1049_s8 + $0x1e0] sm:$0xff]  ;;  %v345_v12 = vld [vmem:[%s1049_s8 + $0x1c8] sm:$0xff]  ;;  %353 = vmatpush.msra.mxu0 %v316_v9 }
  0x41   : > { %476 = vmatpush.msra.mxu3 %v349_v4  ;;  %v314_v13 = vld [vmem:[%s1049_s8 + $0xd0] sm:$0xff]  ;;  %394 = vmatpush.msra.mxu1 %v348_v10  ;;  %v311_v15 = vld [vmem:[%s1049_s8 + $0xb8] sm:$0xff]  ;;  %v312_v17 = vld [vmem:[%s1049_s8 + $0xc0] sm:$0xff] }
  0x42   : > { %436 = vmatpush.msra.mxu2 %v315_v5  ;;  %v346_v14 = vld [vmem:[%s1049_s8 + $0x1d0] sm:$0xff]  ;;  %v343_v16 = vld [vmem:[%s1049_s8 + $0x1b8] sm:$0xff]  ;;  %v344_v18 = vld [vmem:[%s1049_s8 + $0x1c0] sm:$0xff]  ;;  %354 = vmatpush.msra.mxu0 %v314_v13 }
  0x43   : > { %477 = vmatpush.msra.mxu3 %v347_v6  ;;  %395 = vmatpush.msra.mxu1 %v346_v14  ;;  %v309_v19 = vld [vmem:[%s1049_s8 + $0xa8] sm:$0xff]  ;;  %v310_v21 = vld [vmem:[%s1049_s8 + $0xb0] sm:$0xff]  ;;  %v307_v23 = vld [vmem:[%s1049_s8 + $0x98] sm:$0xff] }
  0x44   : > { %437 = vmatpush.msra.mxu2 %v313_v11  ;;  %v341_v20 = vld [vmem:[%s1049_s8 + $0x1a8] sm:$0xff]  ;;  %v342_v22 = vld [vmem:[%s1049_s8 + $0x1b0] sm:$0xff]  ;;  %355 = vmatpush.msra.mxu0 %v312_v17  ;;  %v339_v24 = vld [vmem:[%s1049_s8 + $0x198] sm:$0xff] }
  0x45   : > { %478 = vmatpush.msra.mxu3 %v345_v12  ;;  %396 = vmatpush.msra.mxu1 %v344_v18  ;;  %v308_v25 = vld [vmem:[%s1049_s8 + $0xa0] sm:$0xff]  ;;  %v305_v27 = vld [vmem:[%s1049_s8 + $0x88] sm:$0xff]  ;;  %v306_v29 = vld [vmem:[%s1049_s8 + $0x90] sm:$0xff] }
  0x46   : > { %438 = vmatpush.msra.mxu2 %v311_v15  ;;  %v340_v26 = vld [vmem:[%s1049_s8 + $0x1a0] sm:$0xff]  ;;  %356 = vmatpush.msra.mxu0 %v310_v21  ;;  %v337_v28 = vld [vmem:[%s1049_s8 + $0x188] sm:$0xff]  ;;  %v338_v30 = vld [vmem:[%s1049_s8 + $0x190] sm:$0xff] }
  0x47   : > { %479 = vmatpush.msra.mxu3 %v343_v16  ;;  %397 = vmatpush.msra.mxu1 %v342_v22  ;;  %v303_v31 = vld [vmem:[%s1049_s8 + $0x78] sm:$0xff]  ;;  %v304_v33 = vld [vmem:[%s1049_s8 + $0x80] sm:$0xff]  ;;  %v301_v35 = vld [vmem:[%s1049_s8 + $0x68] sm:$0xff] }
  0x48   : > { %439 = vmatpush.msra.mxu2 %v309_v19  ;;  %357 = vmatpush.msra.mxu0 %v308_v25  ;;  %v335_v32 = vld [vmem:[%s1049_s8 + $0x178] sm:$0xff]  ;;  %v336_v34 = vld [vmem:[%s1049_s8 + $0x180] sm:$0xff]  ;;  %v333_v36 = vld [vmem:[%s1049_s8 + $0x168] sm:$0xff] }
  0x49   : > { %480 = vmatpush.msra.mxu3 %v341_v20  ;;  %398 = vmatpush.msra.mxu1 %v340_v26  ;;  %v302_v37 = vld [vmem:[%s1049_s8 + $0x70] sm:$0xff]  ;;  %v299_v39 = vld [vmem:[%s1049_s8 + $0x58] sm:$0xff]  ;;  %v300_v41 = vld [vmem:[%s1049_s8 + $0x60] sm:$0xff] }
  0x4a   : > { %440 = vmatpush.msra.mxu2 %v307_v23  ;;  %358 = vmatpush.msra.mxu0 %v306_v29  ;;  %v334_v38 = vld [vmem:[%s1049_s8 + $0x170] sm:$0xff]  ;;  %v331_v40 = vld [vmem:[%s1049_s8 + $0x158] sm:$0xff]  ;;  %v332_v42 = vld [vmem:[%s1049_s8 + $0x160] sm:$0xff] }
  0x4b   : > { %481 = vmatpush.msra.mxu3 %v339_v24  ;;  %399 = vmatpush.msra.mxu1 %v338_v30  ;;  %v297_v43 = vld [vmem:[%s1049_s8 + $0x48] sm:$0xff]  ;;  %v298_v45 = vld [vmem:[%s1049_s8 + $0x50] sm:$0xff]  ;;  %v295_v47 = vld [vmem:[%s1049_s8 + $0x38] sm:$0xff] }
  0x4c   : > { %441 = vmatpush.msra.mxu2 %v305_v27  ;;  %359 = vmatpush.msra.mxu0 %v304_v33  ;;  %v329_v44 = vld [vmem:[%s1049_s8 + $0x148] sm:$0xff]  ;;  %v330_v46 = vld [vmem:[%s1049_s8 + $0x150] sm:$0xff]  ;;  %v327_v48 = vld [vmem:[%s1049_s8 + $0x138] sm:$0xff] }
  0x4d   : > { %482 = vmatpush.msra.mxu3 %v337_v28  ;;  %400 = vmatpush.msra.mxu1 %v336_v34  ;;  %v296_v49 = vld [vmem:[%s1049_s8 + $0x40] sm:$0xff]  ;;  %v293_v51 = vld [vmem:[%s1049_s8 + $0x28] sm:$0xff]  ;;  %v294_v53 = vld [vmem:[%s1049_s8 + $0x30] sm:$0xff] }
  0x4e   : > { %442 = vmatpush.msra.mxu2 %v303_v31  ;;  %360 = vmatpush.msra.mxu0 %v302_v37  ;;  %v328_v50 = vld [vmem:[%s1049_s8 + $0x140] sm:$0xff]  ;;  %v325_v52 = vld [vmem:[%s1049_s8 + $0x128] sm:$0xff]  ;;  %v326_v54 = vld [vmem:[%s1049_s8 + $0x130] sm:$0xff] }
  0x4f   : > { %483 = vmatpush.msra.mxu3 %v335_v32  ;;  %401 = vmatpush.msra.mxu1 %v334_v38  ;;  %v291_v55 = vld [vmem:[%s1049_s8 + $0x18] sm:$0xff]  ;;  %v292_v57 = vld [vmem:[%s1049_s8 + $0x20] sm:$0xff]  ;;  %v289_v59 = vld [vmem:[%s1049_s8 + $0x8] sm:$0xff] }
  0x50   : > { %443 = vmatpush.msra.mxu2 %v301_v35  ;;  %361 = vmatpush.msra.mxu0 %v300_v41  ;;  %v323_v56 = vld [vmem:[%s1049_s8 + $0x118] sm:$0xff]  ;;  %v324_v58 = vld [vmem:[%s1049_s8 + $0x120] sm:$0xff]  ;;  %v321_v60 = vld [vmem:[%s1049_s8 + $0x108] sm:$0xff] }
  0x51   : > { %484 = vmatpush.msra.mxu3 %v333_v36  ;;  %402 = vmatpush.msra.mxu1 %v332_v42  ;;  %v272_v61 = vld [vmem:[%s1043_s30] sm:$0xff]  ;;  %v273_v62 = vld [vmem:[%s1043_s30 + $0x8] sm:$0xff]  ;;  %v290_v63 = vld [vmem:[%s1049_s8 + $0x10] sm:$0xff] }
  0x52   : > { %444 = vmatpush.msra.mxu2 %v299_v39  ;;  %362 = vmatpush.msra.mxu0 %v298_v45  ;;  %v322_v0 = vld [vmem:[%s1049_s8 + $0x110] sm:$0xff]  ;;  %v288_v1 = vld [vmem:[%s1049_s8] sm:$0xff]  ;;  %v275_v4 = vld [vmem:[%s1043_s30 + $0x18] sm:$0xff] }
  0x53   : > { %485 = vmatpush.msra.mxu3 %v331_v40  ;;  %403 = vmatpush.msra.mxu1 %v330_v46  ;;  %v320_v2 = vld [vmem:[%s1049_s8 + $0x100] sm:$0xff]  ;;  %v274_v3 = vld [vmem:[%s1043_s30 + $0x10] sm:$0xff]  ;;  %v277_v6 = vld [vmem:[%s1043_s30 + $0x28] sm:$0xff] }
  0x54   : > { %445 = vmatpush.msra.mxu2 %v297_v43  ;;  %363 = vmatpush.msra.mxu0 %v296_v49  ;;  %v276_v5 = vld [vmem:[%s1043_s30 + $0x20] sm:$0xff]  ;;  %v278_v7 = vld [vmem:[%s1043_s30 + $0x30] sm:$0xff]  ;;  %v279_v8 = vld [vmem:[%s1043_s30 + $0x38] sm:$0xff] }
  0x55   : > { %486 = vmatpush.msra.mxu3 %v329_v44  ;;  %404 = vmatpush.msra.mxu1 %v328_v50  ;;  %v280_v9 = vld [vmem:[%s1043_s30 + $0x40] sm:$0xff]  ;;  %v281_v10 = vld [vmem:[%s1043_s30 + $0x48] sm:$0xff]  ;;  %v282_v11 = vld [vmem:[%s1043_s30 + $0x50] sm:$0xff] }
  0x56   : > { %446 = vmatpush.msra.mxu2 %v295_v47  ;;  %364 = vmatpush.msra.mxu0 %v294_v53  ;;  %v283_v12 = vld [vmem:[%s1043_s30 + $0x58] sm:$0xff]  ;;  %v284_v13 = vld [vmem:[%s1043_s30 + $0x60] sm:$0xff]  ;;  %v285_v14 = vld [vmem:[%s1043_s30 + $0x68] sm:$0xff] }
  0x57   : > { %487 = vmatpush.msra.mxu3 %v327_v48  ;;  %405 = vmatpush.msra.mxu1 %v326_v54  ;;  %v286_v15 = vld [vmem:[%s1043_s30 + $0x70] sm:$0xff]  ;;  %v287_v16 = vld [vmem:[%s1043_s30 + $0x78] sm:$0xff]  ;;  %v257_v22 = vld [vmem:[#allocation2] sm:$0xff] }
  0x58   : > { %447 = vmatpush.msra.mxu2 %v293_v51  ;;  %365 = vmatpush.msra.mxu0 %v292_v57  ;;  %v256_v18 = vld [vmem:[#allocation2 + $0x30] sm:$0xff]  ;;  %v258_v28 = vld [vmem:[#allocation2 + $0x58] sm:$0xff]  ;;  %v261_v42 = vld [vmem:[#allocation2 + $0x68] sm:$0xff] }
  0x59   : > { %488 = vmatpush.msra.mxu3 %v325_v52  ;;  %406 = vmatpush.msra.mxu1 %v324_v58  ;;  %v259_v32 = vld [vmem:[#allocation2 + $0x18] sm:$0xff]  ;;  %v260_v38 = vld [vmem:[#allocation2 + $0x50] sm:$0xff]  ;;  %v262_v48 = vld [vmem:[#allocation2 + $0x8] sm:$0xff] }
  0x5a   : > { %448 = vmatpush.msra.mxu2 %v291_v55  ;;  %366 = vmatpush.msra.mxu0 %v290_v63  ;;  %v263_v52 = vld [vmem:[#allocation2 + $0x48] sm:$0xff]  ;;  %v264_v58 = vld [vmem:[#allocation2 + $0x40] sm:$0xff] }
  0x5b   : > { %489 = vmatpush.msra.mxu3 %v323_v56  ;;  %407 = vmatpush.msra.mxu1 %v322_v0 }
  0x5c   : > { %449 = vmatpush.msra.mxu2 %v289_v59  ;;  %367 = vmatpush.msra.mxu0 %v288_v1 }
  0x5d   : > { %490 = vmatpush.msra.mxu3 %v321_v60  ;;  %450 = vmatmul.f32.vlgmr.msra.gmra.mxu2 %v272_v61 }
  0x5e   : > { %491 = vmatmul.f32.vlgmr.msra.gmra.mxu3 %v273_v62  ;;  %408 = vmatpush.msra.mxu1 %v320_v2 }
  0x5f   : > { %368 = vmatmul.f32.vlgmr.msra.gmra.mxu0 %v272_v61  ;;  %409 = vmatmul.f32.vlgmr.msra.gmra.mxu1 %v273_v62  ;;  %v265_v62 = vld [vmem:[#allocation2 + $0x20] sm:$0xff] }
  0x65   : > { %453 = vmatmul.f32.gmra.mxu2 %v274_v3 }
  0x66   : > { %494 = vmatmul.f32.gmra.mxu3 %v275_v4 }
  0x67   : > { %371 = vmatmul.f32.gmra.mxu0 %v274_v3  ;;  %412 = vmatmul.f32.gmra.mxu1 %v275_v4  ;;  %v266_v4 = vld [vmem:[#allocation2 + $0x10] sm:$0xff] }
  0x6d   : > { %456 = vmatmul.f32.gmra.mxu2 %v276_v5 }
  0x6e   : > { %497 = vmatmul.f32.gmra.mxu3 %v277_v6 }
  0x6f   : > { %374 = vmatmul.f32.gmra.mxu0 %v276_v5  ;;  %415 = vmatmul.f32.gmra.mxu1 %v277_v6 }
  0x75   : > { %459 = vmatmul.f32.gmra.mxu2 %v278_v7 }
  0x76   : > { %500 = vmatmul.f32.gmra.mxu3 %v279_v8 }
  0x77   : > { %377 = vmatmul.f32.gmra.mxu0 %v278_v7  ;;  %418 = vmatmul.f32.gmra.mxu1 %v279_v8  ;;  %v267_v8 = vld [vmem:[#allocation2 + $0x38] sm:$0xff] }
  0x7d   : > { %462 = vmatmul.f32.gmra.mxu2 %v280_v9 }
  0x7e   : > { %503 = vmatmul.f32.gmra.mxu3 %v281_v10 }
  0x7f   : > { %380 = vmatmul.f32.gmra.mxu0 %v280_v9  ;;  %421 = vmatmul.f32.gmra.mxu1 %v281_v10 }
  0x85   : > { %465 = vmatmul.f32.gmra.mxu2 %v282_v11 }
  0x86   : > { %506 = vmatmul.f32.gmra.mxu3 %v283_v12 }
  0x87   : > { %383 = vmatmul.f32.gmra.mxu0 %v282_v11  ;;  %424 = vmatmul.f32.gmra.mxu1 %v283_v12 }
  0x8d   : > { %468 = vmatmul.f32.gmra.mxu2 %v284_v13 }
  0x8e   : > { %509 = vmatmul.f32.gmra.mxu3 %v285_v14 }
  0x8f   : > { %386 = vmatmul.f32.gmra.mxu0 %v284_v13  ;;  %427 = vmatmul.f32.gmra.mxu1 %v285_v14  ;;  %v268_v14 = vld [vmem:[#allocation2 + $0x60] sm:$0xff] }
  0x95   : > { %471 = vmatmul.f32.gmra.mxu2 %v286_v15 }
  0x96   : > { %512 = vmatmul.f32.gmra.mxu3 %v287_v16 }
  0x97   : > { %389 = vmatmul.f32.gmra.mxu0 %v286_v15  ;;  %430 = vmatmul.f32.gmra.mxu1 %v287_v16 }
  0xdc   : > { %v369_v17 = vpop.f32.mrf.mxu0  ;;  %v410_v19 = vpop.f32.mrf.mxu1 }
  0xdd   : > { %v411_v20 = vadd.f32 %v410_v19, %v369_v17 }
  0xdf   : > { %v516_v24 = vadd.f32 %v411_v20, %v256_v18  ;;  %v269_v18 = vld [vmem:[#allocation2 + $0x70] sm:$0xff] }
  0xe0   : > { %v451_v21 = vpop.f32.mrf.mxu2 }
  0xe1   : > { %v492_v23 = vpop.f32.mrf.mxu3  ;;  %532 = vst [vmem:[#allocation2 + $0x30] sm:$0xff] %v516_v24  ;;  %v270_v24 = vld [vmem:[#allocation2 + $0x78] sm:$0xff] }
  0xe2   : > { %v493_v25 = vadd.f32 %v492_v23, %v451_v21 }
  0xe4   : > { %v517_v26 = vadd.f32 %v493_v25, %v257_v22  ;;  %v372_v27 = vpop.f32.mrf.mxu0  ;;  %v413_v29 = vpop.f32.mrf.mxu1 }
  0xe5   : > { %v414_v30 = vadd.f32 %v413_v29, %v372_v27 }
  0xe6   : > { %533 = vst [vmem:[#allocation2] sm:$0xff] %v517_v26 }
  0xe7   : > { %v518_v34 = vadd.f32 %v414_v30, %v258_v28  ;;  %v271_v28 = vld [vmem:[#allocation2 + $0x28] sm:$0xff] }
  0xe8   : > { %v454_v31 = vpop.f32.mrf.mxu2 }
  0xe9   : > { %v495_v33 = vpop.f32.mrf.mxu3  ;;  %534 = vst [vmem:[#allocation2 + $0x58] sm:$0xff] %v518_v34 }
  0xea   : > { %v496_v35 = vadd.f32 %v495_v33, %v454_v31 }
  0xec   : > { %v519_v36 = vadd.f32 %v496_v35, %v259_v32  ;;  %v375_v37 = vpop.f32.mrf.mxu0  ;;  %v416_v39 = vpop.f32.mrf.mxu1 }
  0xed   : > { %v417_v40 = vadd.f32 %v416_v39, %v375_v37 }
  0xee   : > { %535 = vst [vmem:[#allocation2 + $0x18] sm:$0xff] %v519_v36 }
  0xef   : > { %v520_v44 = vadd.f32 %v417_v40, %v260_v38 }
  0xf0   : > { %v457_v41 = vpop.f32.mrf.mxu2 }
  0xf1   : > { %v498_v43 = vpop.f32.mrf.mxu3  ;;  %536 = vst [vmem:[#allocation2 + $0x50] sm:$0xff] %v520_v44 }
  0xf2   : > { %v499_v45 = vadd.f32 %v498_v43, %v457_v41 }
  0xf4   : > { %v521_v46 = vadd.f32 %v499_v45, %v261_v42  ;;  %v378_v47 = vpop.f32.mrf.mxu0  ;;  %v419_v49 = vpop.f32.mrf.mxu1 }
  0xf5   : > { %v420_v50 = vadd.f32 %v419_v49, %v378_v47 }
  0xf6   : > { %537 = vst [vmem:[#allocation2 + $0x68] sm:$0xff] %v521_v46 }
  0xf7   : > { %v522_v54 = vadd.f32 %v420_v50, %v262_v48 }
  0xf8   : > { %v460_v51 = vpop.f32.mrf.mxu2 }
  0xf9   : > { %v501_v53 = vpop.f32.mrf.mxu3  ;;  %538 = vst [vmem:[#allocation2 + $0x8] sm:$0xff] %v522_v54 }
  0xfa   : > { %v502_v55 = vadd.f32 %v501_v53, %v460_v51 }
  0xfc   : > { %v523_v56 = vadd.f32 %v502_v55, %v263_v52  ;;  %v381_v57 = vpop.f32.mrf.mxu0  ;;  %v422_v59 = vpop.f32.mrf.mxu1 }
  0xfd   : > { %v423_v60 = vadd.f32 %v422_v59, %v381_v57 }
  0xfe   : > { %539 = vst [vmem:[#allocation2 + $0x48] sm:$0xff] %v523_v56 }
  0xff   : > { %v524_v0 = vadd.f32 %v423_v60, %v264_v58 }
 0x100   : > { %v463_v61 = vpop.f32.mrf.mxu2 }
 0x101   : > { %v504_v63 = vpop.f32.mrf.mxu3  ;;  %540 = vst [vmem:[#allocation2 + $0x40] sm:$0xff] %v524_v0 }
 0x102   : > { %v505_v1 = vadd.f32 %v504_v63, %v463_v61 }
 0x104   : > { %v525_v2 = vadd.f32 %v505_v1, %v265_v62  ;;  %v384_v3 = vpop.f32.mrf.mxu0  ;;  %v425_v5 = vpop.f32.mrf.mxu1 }
 0x105   : > { %v426_v6 = vadd.f32 %v425_v5, %v384_v3 }
 0x106   : > { %541 = vst [vmem:[#allocation2 + $0x20] sm:$0xff] %v525_v2 }
 0x107   : > { %v526_v10 = vadd.f32 %v426_v6, %v266_v4 }
 0x108   : > { %v466_v7 = vpop.f32.mrf.mxu2 }
 0x109   : > { %v507_v9 = vpop.f32.mrf.mxu3  ;;  %542 = vst [vmem:[#allocation2 + $0x10] sm:$0xff] %v526_v10 }
 0x10a   : > { %v508_v11 = vadd.f32 %v507_v9, %v466_v7 }
 0x10c   : > { %v527_v12 = vadd.f32 %v508_v11, %v267_v8  ;;  %v387_v13 = vpop.f32.mrf.mxu0  ;;  %v428_v15 = vpop.f32.mrf.mxu1 }
 0x10d   : > { %v429_v16 = vadd.f32 %v428_v15, %v387_v13 }
 0x10e   : > { %543 = vst [vmem:[#allocation2 + $0x38] sm:$0xff] %v527_v12 }
 0x10f   : > { %v528_v20 = vadd.f32 %v429_v16, %v268_v14 }
 0x110   : > { %v469_v17 = vpop.f32.mrf.mxu2 }
 0x111   : > { %v510_v19 = vpop.f32.mrf.mxu3  ;;  %544 = vst [vmem:[#allocation2 + $0x60] sm:$0xff] %v528_v20 }
 0x112   : > { %v511_v21 = vadd.f32 %v510_v19, %v469_v17 }
 0x114   : > { %v529_v22 = vadd.f32 %v511_v21, %v269_v18  ;;  %v390_v23 = vpop.f32.mrf.mxu0  ;;  %v431_v25 = vpop.f32.mrf.mxu1 }
 0x115   : > { %v432_v26 = vadd.f32 %v431_v25, %v390_v23 }
 0x116   : > { %545 = vst [vmem:[#allocation2 + $0x70] sm:$0xff] %v529_v22 }
 0x117   : > { %v530_v30 = vadd.f32 %v432_v26, %v270_v24 }
 0x118   : > { %v472_v27 = vpop.f32.mrf.mxu2 }
 0x119   : > { %v513_v29 = vpop.f32.mrf.mxu3  ;;  %546 = vst [vmem:[#allocation2 + $0x78] sm:$0xff] %v530_v30 }
 0x11a   : > { %v514_v31 = vadd.f32 %v513_v29, %v472_v27  ;;  %551 = sbr.rel (%p711_p0) target bundleno = 304 (0x130), region = 44 }
 0x11c   : > { %v531_v32 = vadd.f32 %v514_v31, %v271_v28 }
 0x11e   : > { %547 = vst [vmem:[#allocation2 + $0x28] sm:$0xff] %v531_v32 }
 0x11f   : > { %v552_v33 = vld [vmem:[#allocation2 + $0x30] sm:$0xff]  ;;  %v553_v34 = vld [vmem:[#allocation2] sm:$0xff]  ;;  %v554_v35 = vld [vmem:[#allocation2 + $0x58] sm:$0xff] }
 0x120   : > { %568 = vst [vmem:[#allocation8] sm:$0xff] %v552_v33  ;;  %v555_v36 = vld [vmem:[#allocation2 + $0x18] sm:$0xff]  ;;  %v556_v37 = vld [vmem:[#allocation2 + $0x50] sm:$0xff]  ;;  %v557_v38 = vld [vmem:[#allocation2 + $0x68] sm:$0xff] }
 0x121   : > { %569 = vst [vmem:[#allocation8 + $0x8] sm:$0xff] %v553_v34  ;;  %v558_v39 = vld [vmem:[#allocation2 + $0x8] sm:$0xff]  ;;  %v560_v41 = vld [vmem:[#allocation2 + $0x40] sm:$0xff]  ;;  %v562_v43 = vld [vmem:[#allocation2 + $0x10] sm:$0xff] }
 0x122   : > { %570 = vst [vmem:[#allocation8 + $0x10] sm:$0xff] %v554_v35  ;;  %v559_v40 = vld [vmem:[#allocation2 + $0x48] sm:$0xff]  ;;  %v561_v42 = vld [vmem:[#allocation2 + $0x20] sm:$0xff]  ;;  %v563_v44 = vld [vmem:[#allocation2 + $0x38] sm:$0xff] }
 0x123   : > { %571 = vst [vmem:[#allocation8 + $0x18] sm:$0xff] %v555_v36  ;;  %v564_v45 = vld [vmem:[#allocation2 + $0x60] sm:$0xff]  ;;  %v565_v46 = vld [vmem:[#allocation2 + $0x70] sm:$0xff]  ;;  %v566_v47 = vld [vmem:[#allocation2 + $0x78] sm:$0xff] }
 0x124   : > { %572 = vst [vmem:[#allocation8 + $0x20] sm:$0xff] %v556_v37 }
 0x125   : > { %573 = vst [vmem:[#allocation8 + $0x28] sm:$0xff] %v557_v38  ;;  %v567_v48 = vld [vmem:[#allocation2 + $0x28] sm:$0xff] }
 0x126   : > { %574 = vst [vmem:[#allocation8 + $0x30] sm:$0xff] %v558_v39 }
 0x127   : > { %575 = vst [vmem:[#allocation8 + $0x38] sm:$0xff] %v559_v40 }
 0x128   : > { %576 = vst [vmem:[#allocation8 + $0x40] sm:$0xff] %v560_v41 }
 0x129   : > { %577 = vst [vmem:[#allocation8 + $0x48] sm:$0xff] %v561_v42 }
 0x12a   : > { %578 = vst [vmem:[#allocation8 + $0x50] sm:$0xff] %v562_v43 }
 0x12b   : > { %579 = vst [vmem:[#allocation8 + $0x58] sm:$0xff] %v563_v44 }
 0x12c   : > { %580 = vst [vmem:[#allocation8 + $0x60] sm:$0xff] %v564_v45 }
 0x12d   : > { %581 = vst [vmem:[#allocation8 + $0x68] sm:$0xff] %v565_v46 }
 0x12e   : > { %582 = vst [vmem:[#allocation8 + $0x70] sm:$0xff] %v566_v47 }
 0x12f   : > { %583 = vst [vmem:[#allocation8 + $0x78] sm:$0xff] %v567_v48 }
 0x130 PF: > { %p735_p1 = scmp.eq.s32.totalorder %s697_s15, 4  ;;  %s597_s22 = sshll.u32 %s1162_s2, 4  ;;  %s598_s22 = int_to_ptr.hbm [resolvable:$true] %s597_s22 }
 0x131   : > { %s944_s3 = smov [#allocation8]   ;;  %s945_s7 = smov 256  }
 0x132   : > { %s595_s6 = sshll.u32 %s944_s3, 4  ;;  %s946_s9 = smov 16   ;;  %s596_s6 = int_to_ptr.vmem [resolvable:$true] %s595_s6 }
 0x133   : > { %724 = dma.vmem_to_hbm [thread:$0]  (%p735_p1), %s596_s6, 2048, %s598_s22, [#allocation5], %s945_s7, %s945_s7, %s946_s9  }
 0x134   : > { %913 = dma.done.wait (%p735_p1), [#allocation5], 2048  }
 0x135   : > { %915 = vsyncadd (%p735_p1), [#allocation5], 4294965248 }
 0x136 PF: > { %s19_s14 = sadd.s32 1, %s938_s14   ;;  %s1166_s9 = smov %s922_s10 }
 0x137   : > { %p16_p2 = scmp.ge.s32.totalorder %s19_s14, 7   ;;  %s1167_s10 = smov %s926_s11 }
 0x138   : > { %s1168_s11 = smov %s1013_s21  ;;  %s1169_s12 = smov %s934_s13 }
 0x139   : > { %s1170_s13 = smov %s1172_s16  ;;  %18 = sbr.rel (!%p16_p2) target bundleno = 7 (0x7), region = 87 }
 0x13e   :  { %614 = vsyncpa [#allocation4], 1 }
 0x13f   :  { %616 = vsyncpa [#allocation4 + $0x1], 1 }
 0x140   :  { %617 = vsyncpa [#allocation7], 1 }
 0x141   :  { %619 = vsyncpa [#allocation7 + $0x1], 1 }
 0x142   :  { %620 = vsyncpa [#allocation5], 1 }
 0x143   :  { %622 = vsyncpa [#allocation5 + $0x1], 1 }

</bundles_post_ra>
